<compile_context>
chip_gen: v7x
topology: tpu7x:2x2x1
jax: 0.10.0
libtpu: 0.0.40
codegen_flags: <defaults>
</compile_context>

<pallas_src>
import functools
import math

import jax
import jax.numpy as jnp
from jax.experimental import pallas as pl
from jax.experimental.pallas import tpu as pltpu

NEG_SLOPE = 0.01  # torch.nn.LeakyReLU default


# ----------------------------------------------------------------------------
# Hardware-aware sizing
# ----------------------------------------------------------------------------
def _vmem_capacity_bytes():
    try:
        return int(pltpu.get_tpu_info().vmem_capacity_bytes)
    except Exception:
        return 64 << 20  # conservative fallback (v7x per-TC VMEM)


def _tile_budget_bytes(phys):
    # ~1/8 of physical VMEM per output tile, clamped to [4 MiB, 16 MiB]:
    # v7x (64 MiB) -> 8 MiB tiles, v5e/v6e (128 MiB) -> 16 MiB tiles.
    return int(min(16 << 20, max(4 << 20, phys // 8)))


def _vmem_limit_bytes(needed, phys):
    # Double-buffered blocks + compiler-scratch headroom, capped at 3/4 phys.
    return int(min(phys * 3 // 4, max(needed + (8 << 20), 32 << 20)))


def _pick_tile(dim, cap):
    """Largest Mosaic-legal tile <= cap along a sublane dim (mult of 8 or full)."""
    if dim <= cap:
        return dim
    return max(8, (cap // 8) * 8)


def _choose_joint_tiles(T, U, H, budget_bytes, tu_unit):
    """Pick (TT, TU) for the pass-2 output tile.

    Prefer full U (HBM-contiguous rows), then grow TT.  TU is a multiple of
    `tu_unit` (8 for the 4-D layout, 128/gcd(H,128) for the lane-flattened
    layout) or equal to U, which keeps block shapes Mosaic-legal.
    """
    budget_elems = max(1, budget_bytes // 4)
    if U * H * 8 <= budget_elems:
        TU = U
    else:
        TU = max(tu_unit, (budget_elems // (8 * H)) // tu_unit * tu_unit)
        TU = min(TU, U)
    TT = _pick_tile(T, max(8, budget_elems // (TU * H)))
    return TT, TU


# ----------------------------------------------------------------------------
# Kernels
# ----------------------------------------------------------------------------
def _project_kernel(tn_ref, pn_ref, w_tn_ref, w_pn_ref, b_ref, a_ref, c_ref):
    # tn_ref: (1, Tt, F), pn_ref: (1, U, F), w_*: (F, H), b_ref: (1, H)
    # a_ref:  (1, Tt, H) = TN @ W_tn + bias   (bias folded once per T row)
    # c_ref:  (1, U, H)  = PN @ W_pn          (computed once per batch row)
    a = jnp.dot(tn_ref[0], w_tn_ref[...], preferred_element_type=jnp.float32)
    a_ref[0] = (a + b_ref[...]).astype(a_ref.dtype)

    @pl.when(pl.program_id(1) == 0)
    def _():
        c = jnp.dot(pn_ref[0], w_pn_ref[...], preferred_element_type=jnp.float32)
        c_ref[0] = c.astype(c_ref.dtype)


def _joint_kernel_4d(a_ref, c_ref, o_ref):
    # a_ref: (1, TT, H), c_ref: (1, TU, H), o_ref: (1, TT, TU, H)
    a = a_ref[0]
    c = c_ref[0]
    j = a[:, None, :] + c[None, :, :]            # (TT, TU, H)
    o_ref[0] = jnp.maximum(j, NEG_SLOPE * j).astype(o_ref.dtype)


def _joint_kernel_flat(a_ref, c_ref, o_ref, *, tu):
    # Lane-dense layout for H not a multiple of 128.
    # a_ref: (1, TT, H), c_ref: (1, 1, TU*H), o_ref: (1, TT, TU*H)
    a = a_ref[0]                                 # (TT, H)
    c = c_ref[0]                                 # (1, TU*H)
    j = jnp.tile(a, (1, tu)) + c                 # (TT, TU*H)
    o_ref[0] = jnp.maximum(j, NEG_SLOPE * j).astype(o_ref.dtype)


# ----------------------------------------------------------------------------
# Wrapper
# ----------------------------------------------------------------------------
def transducer_joint_concat(input_TN, input_PN, W, bias, *,
                            matmul_dtype=None, out_dtype=jnp.float32):
    """input_TN: (B, T, 1, F), input_PN: (B, 1, U, F), W: (2F, H), bias: (H,).

    matmul_dtype: optionally bf16-cast the pass-1 matmul inputs (fp32 accum).
    out_dtype:    optionally emit a bf16 joint tensor (halves HBM writeback).
    Both default to exact fp32 torch semantics.
    """
    B, T, one_t, F = input_TN.shape
    _, one_p, U, F2 = input_PN.shape
    assert one_t == 1 and one_p == 1 and F == F2
    twoF, H = W.shape
    assert twoF == 2 * F

    phys = _vmem_capacity_bytes()
    budget = _tile_budget_bytes(phys)

    tn = input_TN.reshape(B, T, F)
    pn = input_PN.reshape(B, U, F)
    w_tn = W[:F]
    w_pn = W[F:]
    b2 = bias.reshape(1, H).astype(jnp.float32)
    if matmul_dtype is not None:
        tn = tn.astype(matmul_dtype)
        pn = pn.astype(matmul_dtype)
        w_tn = w_tn.astype(matmul_dtype)
        w_pn = w_pn.astype(matmul_dtype)
    in_isz = jnp.dtype(tn.dtype).itemsize
    o_isz = jnp.dtype(out_dtype).itemsize

    # -------- Pass 1: per-batch projections, tiled along T ------------------
    row_bytes = 2 * (F * in_isz + H * 4)          # double-buffered in + out
    Tt = _pick_tile(T, max(8, budget // row_bytes))
    nTt = pl.cdiv(T, Tt)
    need1 = (2 * (Tt * F * in_isz + Tt * H * 4)
             + 2 * (U * F * in_isz + U * H * 4)
             + 4 * F * H * in_isz + 2 * H * 4)
    proj_cost = pl.CostEstimate(
        flops=2 * B * T * F * H + 2 * B * U * F * H + B * T * H,
        transcendentals=0,
        bytes_accessed=in_isz * (B * T * F + B * U * F + 2 * F * H)
                       + 4 * (H + B * T * H + B * U * H),
    )
    a, c = pl.pallas_call(
        _project_kernel,
        out_shape=(
            jax.ShapeDtypeStruct((B, T, H), jnp.float32),
            jax.ShapeDtypeStruct((B, U, H), jnp.float32),
        ),
        grid_spec=pltpu.PrefetchScalarGridSpec(
            num_scalar_prefetch=0,
            grid=(B, nTt),
            in_specs=[
                pl.BlockSpec((1, Tt, F), lambda b, t: (b, t, 0)),
                pl.BlockSpec((1, U, F), lambda b, t: (b, 0, 0)),
                pl.BlockSpec((F, H), lambda b, t: (0, 0)),
                pl.BlockSpec((F, H), lambda b, t: (0, 0)),
                pl.BlockSpec((1, H), lambda b, t: (0, 0)),
            ],
            out_specs=(
                pl.BlockSpec((1, Tt, H), lambda b, t: (b, t, 0)),
                pl.BlockSpec((1, U, H), lambda b, t: (b, 0, 0)),
            ),
        ),
        compiler_params=pltpu.CompilerParams(
            # c output revisits the same block across t -> t is "arbitrary".
            dimension_semantics=("parallel", "arbitrary"),
            vmem_limit_bytes=_vmem_limit_bytes(need1, phys),
        ),
        cost_estimate=proj_cost,
    )(tn, pn, w_tn, w_pn, b2)

    # -------- Pass 2: tiled broadcast-add + LeakyReLU (HBM-write bound) -----
    if H % 128 == 0:
        # Native 4-D layout: stores are already lane-dense.
        TT, TU = _choose_joint_tiles(T, U, H, budget, 8)
        nT, nU = pl.cdiv(T, TT), pl.cdiv(U, TU)
        need2 = 2 * (TT * TU * H * o_isz + TT * H * 4 + TU * H * 4)
        joint_cost = pl.CostEstimate(
            flops=3 * B * T * U * H,
            transcendentals=0,
            bytes_accessed=4 * (B * nU * T * H + B * nT * U * H)
                           + o_isz * B * T * U * H,
        )
        return pl.pallas_call(
            _joint_kernel_4d,
            out_shape=jax.ShapeDtypeStruct((B, T, U, H), out_dtype),
            grid_spec=pltpu.PrefetchScalarGridSpec(
                num_scalar_prefetch=0,
                grid=(B, nT, nU),            # u innermost: `a` tile is reused
                in_specs=[
                    pl.BlockSpec((1, TT, H), lambda b, t, u: (b, t, 0)),
                    pl.BlockSpec((1, TU, H), lambda b, t, u: (b, u, 0)),
                ],
                out_specs=pl.BlockSpec((1, TT, TU, H),
                                       lambda b, t, u: (b, t, u, 0)),
            ),
            compiler_params=pltpu.CompilerParams(
                dimension_semantics=("parallel", "parallel", "parallel"),
                vmem_limit_bytes=_vmem_limit_bytes(need2, phys),
            ),
            cost_estimate=joint_cost,
        )(a, c)

    # Lane-flattened layout: present the output as (B, T, U*H) so the trailing
    # block dim is a multiple of 128 (or full) -> unmasked vst.  H is the
    # contiguous minor dim in memory, so both reshapes below are free.
    lane_unit = 128 // math.gcd(H, 128)
    TT, TU = _choose_joint_tiles(T, U, H, budget, lane_unit)
    nT, nU = pl.cdiv(T, TT), pl.cdiv(U, TU)
    c_flat = c.reshape(B, 1, U * H)
    need2 = 2 * (TT * TU * H * o_isz + TT * H * 4 + TU * H * 4)
    joint_cost = pl.CostEstimate(
        flops=3 * B * T * U * H,
        transcendentals=0,
        bytes_accessed=4 * (B * nU * T * H + B * nT * U * H)
                       + o_isz * B * T * U * H,
    )
    out_flat = pl.pallas_call(
        functools.partial(_joint_kernel_flat, tu=TU),
        out_shape=jax.ShapeDtypeStruct((B, T, U * H), out_dtype),
        grid_spec=pltpu.PrefetchScalarGridSpec(
            num_scalar_prefetch=0,
            grid=(B, nT, nU),
            in_specs=[
                pl.BlockSpec((1, TT, H), lambda b, t, u: (b, t, 0)),
                pl.BlockSpec((1, 1, TU * H), lambda b, t, u: (b, 0, u)),
            ],
            out_specs=pl.BlockSpec((1, TT, TU * H),
                                   lambda b, t, u: (b, t, u)),
        ),
        compiler_params=pltpu.CompilerParams(
            dimension_semantics=("parallel", "parallel", "parallel"),
            vmem_limit_bytes=_vmem_limit_bytes(need2, phys),
        ),
        cost_estimate=joint_cost,
    )(a, c_flat)
    return out_flat.reshape(B, T, U, H)


# ----------------------------------------------------------------------------
# Reference + test
# ----------------------------------------------------------------------------
def _reference(input_TN, input_PN, W, bias):
    # Pure-JAX reference: expand -> concat -> linear -> leaky_relu
    B, T, _, F = input_TN.shape
    U = input_PN.shape[2]
    xs = jnp.broadcast_to(input_TN, (B, T, U, F))
    ym = jnp.broadcast_to(input_PN, (B, T, U, F))
    joint = jnp.concatenate([xs, ym], axis=-1)          # (B, T, U, 2F)
    lin = joint @ W + bias                              # (B, T, U, H)
    return jnp.where(lin > 0, lin, NEG_SLOPE * lin)


if __name__ == "__main__":
    key = jax.random.PRNGKey(0)
    keys = jax.random.split(key, 8)

    # Case 1: H not a multiple of 128 -> lane-flattened output path.
    B, T, U, F, H = 2, 8, 4, 32, 64
    input_TN = jax.random.uniform(keys[0], (B, T, 1, F), dtype=jnp.float32)
    input_PN = jax.random.uniform(keys[1], (B, 1, U, F), dtype=jnp.float32)
    W = jax.random.normal(keys[2], (2 * F, H), dtype=jnp.float32) * 0.05
    bias = jax.random.normal(keys[3], (H,), dtype=jnp.float32) * 0.01

    out = jax.block_until_ready(
        transducer_joint_concat(input_TN, input_PN, W, bias))
    ref = _reference(input_TN, input_PN, W, bias)
    assert out.shape == (B, T, U, H)
    assert jnp.allclose(out, ref, atol=1e-4, rtol=1e-4)

    # Case 2: H a multiple of 128 -> native 4-D lane-dense path.
    B2, T2, U2, F2, H2 = 2, 16, 8, 32, 128
    input_TN2 = jax.random.uniform(keys[4], (B2, T2, 1, F2), dtype=jnp.float32)
    input_PN2 = jax.random.uniform(keys[5], (B2, 1, U2, F2), dtype=jnp.float32)
    W2 = jax.random.normal(keys[6], (2 * F2, H2), dtype=jnp.float32) * 0.05
    bias2 = jax.random.normal(keys[7], (H2,), dtype=jnp.float32) * 0.01

    out2 = jax.block_until_ready(
        transducer_joint_concat(input_TN2, input_PN2, W2, bias2))
    ref2 = _reference(input_TN2, input_PN2, W2, bias2)
    assert out2.shape == (B2, T2, U2, H2)
    assert jnp.allclose(out2, ref2, atol=1e-4, rtol=1e-4)

    print("KERNEL_OK")
</pallas_src>

<mosaic_0001>
module attributes {stable_mosaic.version = 11 : i64} {
  func.func @_project_kernel(%arg0: i32, %arg1: i32, %arg2: memref<1x8x32xf32, #tpu.memory_space<vmem>>, %arg3: memref<1x4x32xf32, #tpu.memory_space<vmem>>, %arg4: memref<32x64xf32, #tpu.memory_space<vmem>>, %arg5: memref<32x64xf32, #tpu.memory_space<vmem>>, %arg6: memref<1x64xf32, #tpu.memory_space<vmem>>, %arg7: memref<1x8x64xf32, #tpu.memory_space<vmem>>, %arg8: memref<1x4x64xf32, #tpu.memory_space<vmem>>) attributes {dimension_semantics = [#tpu.dimension_semantics<parallel>, #tpu.dimension_semantics<arbitrary>], iteration_bounds = array<i64: 2, 1>, scalar_prefetch = 0 : i64, scratch_operands = 0 : i64, tpu.core_type = #tpu.core_type<tc>, window_params = [{transform_indices = @transform_0, window_bounds = array<i64: 1, 8, 32>}, {transform_indices = @transform_1, window_bounds = array<i64: 1, 4, 32>}, {pipeline_mode = #tpu.pipeline_mode<synchronous>, transform_indices = @transform_2, window_bounds = array<i64: 32, 64>}, {pipeline_mode = #tpu.pipeline_mode<synchronous>, transform_indices = @transform_3, window_bounds = array<i64: 32, 64>}, {pipeline_mode = #tpu.pipeline_mode<synchronous>, transform_indices = @transform_4, window_bounds = array<i64: 1, 64>}, {transform_indices = @transform_5, window_bounds = array<i64: 1, 8, 64>}, {transform_indices = @transform_6, window_bounds = array<i64: 1, 4, 64>}]} {
    %c0 = arith.constant 0 : index
    %c0_0 = arith.constant 0 : index
    %c0_1 = arith.constant 0 : index
    %0 = vector.load %arg2[%c0, %c0_0, %c0_1] : memref<1x8x32xf32, #tpu.memory_space<vmem>>, vector<1x8x32xf32>
    %1 = vector.shape_cast %0 : vector<1x8x32xf32> to vector<8x32xf32>
    %c0_2 = arith.constant 0 : index
    %c0_3 = arith.constant 0 : index
    %2 = vector.load %arg4[%c0_2, %c0_3] : memref<32x64xf32, #tpu.memory_space<vmem>>, vector<32x64xf32>
    %cst = arith.constant dense<0.000000e+00> : vector<8x64xf32>
    %3 = tpu.matmul %1, %2, %cst {dimension_numbers = #tpu.dot_dimension_numbers<[1], [0], [0], [1], [0, 0, 1, 1], [], []>} : vector<8x32xf32>, vector<32x64xf32>, vector<8x64xf32> -> vector<8x64xf32>
    %c0_4 = arith.constant 0 : index
    %c0_5 = arith.constant 0 : index
    %4 = vector.load %arg6[%c0_4, %c0_5] : memref<1x64xf32, #tpu.memory_space<vmem>>, vector<1x64xf32>
    %5 = vector.broadcast %4 : vector<1x64xf32> to vector<8x64xf32>
    %6 = arith.addf %3, %5 : vector<8x64xf32>
    %c0_6 = arith.constant 0 : index
    %c0_7 = arith.constant 0 : index
    %c0_8 = arith.constant 0 : index
    %7 = vector.load %arg7[%c0_6, %c0_7, %c0_8] : memref<1x8x64xf32, #tpu.memory_space<vmem>>, vector<1x8x64xf32>
    %8 = vector.shape_cast %7 : vector<1x8x64xf32> to vector<8x64xf32>
    %9 = vector.shape_cast %6 : vector<8x64xf32> to vector<1x8x64xf32>
    tpu.vector_store %arg7[%c0_6, %c0_7, %c0_8], %9 {strides = array<i32>} : memref<1x8x64xf32, #tpu.memory_space<vmem>>, vector<1x8x64xf32>,
    %c0_i32 = arith.constant 0 : i32
    %10 = arith.cmpi eq, %arg1, %c0_i32 : i32
    %11 = arith.extui %10 : i1 to i32
    %c0_i32_9 = arith.constant 0 : i32
    %12 = arith.cmpi ne, %11, %c0_i32_9 : i32
    scf.if %12 {
      %c0_10 = arith.constant 0 : index
      %c0_11 = arith.constant 0 : index
      %c0_12 = arith.constant 0 : index
      %13 = vector.load %arg3[%c0_10, %c0_11, %c0_12] : memref<1x4x32xf32, #tpu.memory_space<vmem>>, vector<1x4x32xf32>
      %14 = vector.shape_cast %13 : vector<1x4x32xf32> to vector<4x32xf32>
      %c0_13 = arith.constant 0 : index
      %c0_14 = arith.constant 0 : index
      %15 = vector.load %arg5[%c0_13, %c0_14] : memref<32x64xf32, #tpu.memory_space<vmem>>, vector<32x64xf32>
      %cst_15 = arith.constant dense<0.000000e+00> : vector<4x64xf32>
      %16 = tpu.matmul %14, %15, %cst_15 {dimension_numbers = #tpu.dot_dimension_numbers<[1], [0], [0], [1], [0, 0, 1, 1], [], []>} : vector<4x32xf32>, vector<32x64xf32>, vector<4x64xf32> -> vector<4x64xf32>
      %c0_16 = arith.constant 0 : index
      %c0_17 = arith.constant 0 : index
      %c0_18 = arith.constant 0 : index
      %17 = vector.load %arg8[%c0_16, %c0_17, %c0_18] : memref<1x4x64xf32, #tpu.memory_space<vmem>>, vector<1x4x64xf32>
      %18 = vector.shape_cast %17 : vector<1x4x64xf32> to vector<4x64xf32>
      %19 = vector.shape_cast %16 : vector<4x64xf32> to vector<1x4x64xf32>
      tpu.vector_store %arg8[%c0_16, %c0_17, %c0_18], %19 {strides = array<i32>} : memref<1x4x64xf32, #tpu.memory_space<vmem>>, vector<1x4x64xf32>,
    } else {
    }
    return
  }
  func.func @transform_0(%arg0: i32, %arg1: i32) -> (i32, i32, i32) {
    %c0_i32 = arith.constant 0 : i32
    %c0_i32_0 = arith.constant 0 : i32
    return %arg0, %arg1, %c0_i32 : i32, i32, i32
  }
  func.func @transform_1(%arg0: i32, %arg1: i32) -> (i32, i32, i32) {
    %c0_i32 = arith.constant 0 : i32
    %c0_i32_0 = arith.constant 0 : i32
    %c0_i32_1 = arith.constant 0 : i32
    return %arg0, %c0_i32, %c0_i32_0 : i32, i32, i32
  }
  func.func @transform_2(%arg0: i32, %arg1: i32) -> (i32, i32) {
    %c0_i32 = arith.constant 0 : i32
    %c0_i32_0 = arith.constant 0 : i32
    %c0_i32_1 = arith.constant 0 : i32
    return %c0_i32, %c0_i32_0 : i32, i32
  }
  func.func @transform_3(%arg0: i32, %arg1: i32) -> (i32, i32) {
    %c0_i32 = arith.constant 0 : i32
    %c0_i32_0 = arith.constant 0 : i32
    %c0_i32_1 = arith.constant 0 : i32
    return %c0_i32, %c0_i32_0 : i32, i32
  }
  func.func @transform_4(%arg0: i32, %arg1: i32) -> (i32, i32) {
    %c0_i32 = arith.constant 0 : i32
    %c0_i32_0 = arith.constant 0 : i32
    %c0_i32_1 = arith.constant 0 : i32
    return %c0_i32, %c0_i32_0 : i32, i32
  }
  func.func @transform_5(%arg0: i32, %arg1: i32) -> (i32, i32, i32) {
    %c0_i32 = arith.constant 0 : i32
    %c0_i32_0 = arith.constant 0 : i32
    return %arg0, %arg1, %c0_i32 : i32, i32, i32
  }
  func.func @transform_6(%arg0: i32, %arg1: i32) -> (i32, i32, i32) {
    %c0_i32 = arith.constant 0 : i32
    %c0_i32_0 = arith.constant 0 : i32
    %c0_i32_1 = arith.constant 0 : i32
    return %arg0, %c0_i32, %c0_i32_0 : i32, i32, i32
  }
}

</mosaic_0001>

<bundles_post_ra>
// kernel: tpu_custom_call.1
= control target key start
LH: loop header
LB: loop body
LE: loop exit
PB: predicated region body
PF: predicated region fallthrough
CT: control target
= control target key end

     0   :  { %s1514_s0 = inlined_call_operand.hbm [shape: f32[2,8,32], index: 0, kind: input, shape index: {}]   ;;  %s1515_s1 = inlined_call_operand.hbm [shape: f32[2,4,32], index: 1, kind: input, shape index: {}]   ;;  %s1516_s2 = inlined_call_operand.hbm [shape: f32[32,64], index: 2, kind: input, shape index: {}]   ;;  %s1517_s3 = inlined_call_operand.hbm [shape: f32[32,64], index: 3, kind: input, shape index: {}]   ;;  %s1518_s4 = inlined_call_operand.vmem [shape: f32[1,64], index: 4, kind: input, shape index: {}]   ;;  %s1519_s5 = inlined_call_operand.hbm [shape: f32[2,8,64], index: 5, kind: output, shape index: {0}]   ;;  %s1520_s6 = inlined_call_operand.hbm [shape: f32[2,4,64], index: 6, kind: output, shape index: {1}]  }
   0x1   :  { %1526 = sst [smem:[#allocation20_spill]] %s1514_s0 }
   0x2   :  { %1527 = sst [smem:[#allocation21_spill]] %s1516_s2 }
   0x3   :  { %1528 = sst [smem:[#allocation22_spill]] %s1517_s3 }
   0x4   :  { %12 = vsyncpa [#allocation3], 0 }
   0x5   :  { %14 = vsyncpa [#allocation3 + $0x1], 0 }
   0x6   :  { %15 = vsyncpa [#allocation6], 0 }
   0x7   :  { %17 = vsyncpa [#allocation6 + $0x1], 0 }
   0x8   :  { %18 = vsyncpa [#allocation9], 0 }
   0x9   :  { %19 = vsyncpa [#allocation4], 0 }
   0xa   :  { %21 = vsyncpa [#allocation4 + $0x1], 0 }
   0xb   :  { %22 = vsyncpa [#allocation12], 0 }
   0xc   :  { %24 = vsyncpa [#allocation12 + $0x1], 0  ;;  %s1178_s21 = smov 0   ;;  %s1180_s22 = smov 0  }
   0xd   :  { %s1182_s23 = smov 0   ;;  %s1184_s24 = smov 0  }
   0xe   :  { %s1186_s25 = smov 0   ;;  %s1188_s26 = smov 0  }
   0xf LB: > { %s1209_s27 = sadd.s32 4294967295, %s1130_s26   ;;  %s721_s28 = sadd.s32 4294967294, %s1130_s26   ;;  %s1130_s26 = sphi %s1188_s26, %s30_s26   ;;  %s1126_s25 = sphi %s1186_s25, %s1555_s25   ;;  %s1122_s24 = sphi %s1184_s24, %s1554_s24   ;;  %s1118_s23 = sphi %s1182_s23, %s1553_s23   ;;  %s1114_s22 = sphi %s1180_s22, %s1552_s22   ;;  %s1110_s21 = sphi %s1178_s21, %s1551_s21  }
  0x10   : > { %p64_p0 = scmp.ne.s32.totalorder %s1114_s22, %s1110_s21  ;;  %p1521_p1 = scmp.eq.s32.totalorder %s1209_s27, 0 }
  0x11   : > { %p185_p3 = scmp.eq.s32.totalorder %s721_s28, 1  ;;  %p722_p5 = scmp.ge.s32.totalorder %s1130_s26, 1 }
  0x12   : > { %p1218_p4 = por %p1521_p1, %p64_p0  ;;  %p218_p7 = scmp.lt.s32.totalorder %s1130_s26, 3 }
  0x13   : > { %p1223_p6 = por %p185_p3, %p64_p0  ;;  %s1132_s8 = smov [#allocation7]  }
  0x14   : > { %s1529_s29 = scalar_select %p1218_p4, 1, 0 }
  0x15   : > { %s1530_s30 = scalar_select %p1223_p6, 1, 0 }
  0x16   : > { %p1228_p8 = pnand %p722_p5, %p218_p7  ;;  %s230_s9 = sshll.u32 %s1132_s8, 4  ;;  %s1232_s9 = int_to_ptr.vmem [resolvable:$true] %s230_s9 }
  0x17   : > { %s1133_s11 = smov [#allocation8]   ;;  %s1533_s2 = sld [smem:[#allocation21_spill]] }
  0x18   : > { %s1531_s7 = scalar_select %p1228_p8, 1, 0 }
  0x19   : > { %p806_p9 = pneg %p1228_p8  ;;  %s243_s12 = sshll.u32 %s1133_s11, 4  ;;  %s1243_s12 = int_to_ptr.vmem [resolvable:$true] %s243_s12 }
  0x1b   : > { %p1239_p11 = pnand %p806_p9, %p1521_p1 }
  0x1d   : > { %s888_s15 = scalar_lea.hbm %s1533_s2, 512  ;;  %p890_p13 = pneg %p1239_p11 }
  0x1e   : > { %p889_p12 = scmp.ne.s32.totalorder %s1533_s2, %s888_s15  ;;  %p895_p5 = scmp.lt.u32.totalorder %s888_s15, %s1533_s2 }
  0x20   : > { %p891_p0 = pnand %p890_p13, %p889_p12 }
  0x22   : > { %p892_p3 = pneg %p891_p0 }
  0x24   : > { %p897_p7 = pnand %p895_p5, %p892_p3 }
  0x26   : > { %900 = shalt.err (!%p897_p7)
}
  0x27   : > { %s901_s20 = scalar_lea.vmem %s1232_s9, 512  ;;  %p909_p2 = scmp.lt.s32.totalorder %s1232_s9, %s1232_s9 }
  0x28   : > { %p902_p9 = scmp.ne.s32.totalorder %s1232_s9, %s901_s20  ;;  %p910_p12 = scmp.lt.s32.totalorder %s901_s20, %s901_s20 }
  0x2a   : > { %p904_p10 = pnand %p902_p9, %p890_p13  ;;  %p911_p0 = por %p910_p12, %p909_p2 }
  0x2c   : > { %p905_p1 = pneg %p904_p10 }
  0x2e   : > { %p912_p6 = pnand %p911_p0, %p905_p1 }
  0x30   : > { %915 = shalt.err (!%p912_p6)
}
  0x31   : > { %s1134_s28 = smov 128   ;;  %s1135_s8 = smov 8  }
  0x32   : > { %809 = dma.hbm_to_vmem [thread:$0]  (!%p1239_p11), %s1533_s2, 512, %s1232_s9, [#allocation6], %s1134_s28, %s1134_s28, %s1135_s8  }
  0x33   : > { %s1534_s3 = sld [smem:[#allocation22_spill]] }
  0x39   : > { %s916_s16 = scalar_lea.hbm %s1534_s3, 512 }
  0x3a   : > { %p917_p2 = scmp.ne.s32.totalorder %s1534_s3, %s916_s16  ;;  %p923_p10 = scmp.lt.u32.totalorder %s916_s16, %s1534_s3 }
  0x3c   : > { %p919_p1 = pnand %p917_p2, %p890_p13 }
  0x3e   : > { %p920_p6 = pneg %p919_p1 }
  0x40   : > { %p925_p3 = pnand %p923_p10, %p920_p6 }
  0x42   : > { %928 = shalt.err (!%p925_p3)
}
  0x43   : > { %s929_s9 = scalar_lea.vmem %s1243_s12, 512  ;;  %p937_p12 = scmp.lt.s32.totalorder %s1243_s12, %s1243_s12 }
  0x44   : > { %p930_p5 = scmp.ne.s32.totalorder %s1243_s12, %s929_s9  ;;  %p938_p0 = scmp.lt.s32.totalorder %s929_s9, %s929_s9 }
  0x46   : > { %p932_p7 = pnand %p930_p5, %p890_p13  ;;  %p939_p2 = por %p938_p0, %p937_p12 }
  0x48   : > { %p933_p9 = pneg %p932_p7 }
  0x4a   : > { %p940_p1 = pnand %p939_p2, %p933_p9 }
  0x4c   : > { %943 = shalt.err (!%p940_p1)
}
  0x4d   : > { %812 = dma.hbm_to_vmem [thread:$0]  (!%p1239_p11), %s1534_s3, 512, %s1243_s12, [#allocation9], %s1134_s28, %s1134_s28, %s1135_s8  }
  0x4e   : > { %s42_s14 = sadd.s32 1, %s1126_s25  ;;  %s51_s15 = sadd.s32 1, %s1118_s23 }
  0x4f   : > { %p44_p13 = scmp.ge.s32.totalorder %s42_s14, 2  ;;  %p58_p6 = scmp.ne.s32.totalorder %s1118_s23, %s1114_s22 }
  0x50   : > { %p59_p10 = scmp.eq.s32.totalorder %s1130_s26, 0  ;;  %p829_p3 = scmp.lt.s32.totalorder %s1130_s26, 2 }
  0x51   : > { %s1557_s14 = smov (%p44_p13, %s42_s14), 0  ;;  %p1536_p7 = scmp.eq.s32.totalorder %s1209_s27, 1 }
  0x52   : > { %1535 = sst [smem:[#allocation19_spill]] %s1557_s14  ;;  %p60_p5 = por %p59_p10, %p58_p6 }
  0x53   : > { %p1307_p9 = por %p1536_p7, %p58_p6  ;;  %s46_s16 = ssub.s32 %s1126_s25, %s1557_s14 }
  0x54   : > { %s1314_s17 = sand.u32 1, %s1118_s23   ;;  %p49_p11 = scmp.eq.s32.totalorder %s46_s16, 0 }
  0x55   : > { %s1537_s10 = scalar_select %p1307_p9, 1, 0 }
  0x56   : > { %s726_s12 = sshll.u32 %s1314_s17, 3  ;;  %s727_s28 = sshll.u32 %s1126_s25, 7 }
  0x57   : > { %s1319_s8 = scalar_select %p49_p11, %s1118_s23, %s51_s15  }
  0x58   : > { %s1538_s0 = sld [smem:[#allocation20_spill]]  ;;  %s264_s9 = scalar_lea.vmem [#allocation2], %s726_s12 }
  0x59   : > { %s272_s11 = sshll.u32 %s264_s9, 4  ;;  %p1328_p12 = pnand %p829_p3, %p60_p5  ;;  %s1332_s11 = int_to_ptr.vmem [resolvable:$true] %s272_s11 }
  0x5a   : > { %s261_s16 = scalar_lea.sflag [#allocation3], %s1314_s17 }
  0x5b   : > { %p946_p2 = pneg %p1328_p12 }
  0x5e   : > { %s1324_s20 = scalar_lea.hbm %s1538_s0, %s727_s28  ;;  %s949_s19 = scalar_lea.hbm %s1538_s0, 256 }
  0x5f   : > { %s944_s18 = scalar_lea.hbm %s1324_s20, 128  ;;  %p950_p6 = scmp.lt.u32.totalorder %s1324_s20, %s1538_s0 }
  0x60   : > { %p945_p0 = scmp.ne.s32.totalorder %s1324_s20, %s944_s18  ;;  %p951_p10 = scmp.lt.u32.totalorder %s949_s19, %s944_s18 }
  0x61   : > { %p953_p5 = scmp.lt.u32.totalorder %s944_s18, %s1324_s20 }
  0x62   : > { %p947_p1 = pnand %p946_p2, %p945_p0  ;;  %p952_p3 = por %p951_p10, %p950_p6 }
  0x64   : > { %p948_p13 = pneg %p947_p1  ;;  %p954_p7 = por %p953_p5, %p952_p3 }
  0x66   : > { %p955_p11 = pnand %p954_p7, %p948_p13 }
  0x68   : > { %958 = shalt.err (!%p955_p11)
}
  0x69   : > { %s959_s15 = scalar_lea.vmem %s1332_s11, 128  ;;  %s1136_s12 = smov [#allocation2]  }
  0x6a   : > { %p960_p0 = scmp.ne.s32.totalorder %s1332_s11, %s959_s15  ;;  %s964_s28 = sshll.u32 %s1136_s12, 4  ;;  %s965_s28 = int_to_ptr.vmem [resolvable:$false] %s964_s28 }
  0x6b   : > { %s966_s2 = scalar_lea.vmem %s965_s28, 256  ;;  %p967_p4 = scmp.lt.s32.totalorder %s1332_s11, %s965_s28 }
  0x6c   : > { %p962_p1 = pnand %p960_p0, %p946_p2  ;;  %p968_p6 = scmp.lt.s32.totalorder %s966_s2, %s959_s15 }
  0x6e   : > { %p963_p9 = pneg %p962_p1  ;;  %p969_p10 = por %p968_p6, %p967_p4 }
  0x70   : > { %p970_p3 = pnand %p969_p10, %p963_p9 }
  0x72   : > { %973 = shalt.err (!%p970_p3)
}
  0x73   : > { %816 = dma.hbm_to_vmem [thread:$0]  (!%p1328_p12), %s1324_s20, 128, %s1332_s11, %s261_s16  }
  0x74   : > { %s728_s18 = sshll.u32 %s1314_s17, 2  ;;  %s729_s19 = sshll.u32 %s1126_s25, 6 }
  0x75   : > { %s1366_s0 = scalar_lea.hbm %s1515_s1, %s729_s19  ;;  %s283_s15 = scalar_lea.vmem [#allocation5], %s728_s18 }
  0x76   : > { %s290_s28 = sshll.u32 %s283_s15, 4  ;;  %s1540_s2 = sand.u32 1, %s1130_s26   ;;  %s291_s28 = int_to_ptr.vmem [resolvable:$true] %s290_s28 }
  0x77   : > { %s280_s3 = scalar_lea.sflag [#allocation6], %s1540_s2  ;;  %s974_s14 = scalar_lea.hbm %s1366_s0, 64 }
  0x78   : > { %p975_p4 = scmp.ne.s32.totalorder %s1366_s0, %s974_s14  ;;  %s979_s11 = scalar_lea.hbm %s1515_s1, 128 }
  0x79   : > { %p980_p5 = scmp.lt.u32.totalorder %s1366_s0, %s1515_s1  ;;  %p981_p7 = scmp.lt.u32.totalorder %s979_s11, %s974_s14 }
  0x7a   : > { %p977_p9 = pnand %p975_p4, %p946_p2  ;;  %p983_p0 = scmp.lt.u32.totalorder %s974_s14, %s1366_s0 }
  0x7b   : > { %p982_p11 = por %p981_p7, %p980_p5 }
  0x7c   : > { %p978_p13 = pneg %p977_p9 }
  0x7d   : > { %p984_p1 = por %p983_p0, %p982_p11 }
  0x7f   : > { %p985_p6 = pnand %p984_p1, %p978_p13 }
  0x81   : > { %988 = shalt.err (!%p985_p6)
}
  0x82   : > { %s989_s18 = scalar_lea.vmem %s291_s28, 64  ;;  %s1137_s9 = smov [#allocation5]  }
  0x83   : > { %p990_p10 = scmp.ne.s32.totalorder %s291_s28, %s989_s18  ;;  %s994_s12 = sshll.u32 %s1137_s9, 4  ;;  %s995_s12 = int_to_ptr.vmem [resolvable:$false] %s994_s12 }
  0x84   : > { %s996_s15 = scalar_lea.vmem %s995_s12, 128  ;;  %p997_p9 = scmp.lt.s32.totalorder %s291_s28, %s995_s12 }
  0x85   : > { %p992_p3 = pnand %p990_p10, %p946_p2  ;;  %p998_p8 = scmp.lt.s32.totalorder %s996_s15, %s989_s18 }
  0x87   : > { %p993_p4 = pneg %p992_p3  ;;  %p999_p5 = por %p998_p8, %p997_p9 }
  0x89   : > { %p1000_p7 = pnand %p999_p5, %p993_p4 }
  0x8b   : > { %1003 = shalt.err (!%p1000_p7)
}
  0x8c   : > { %819 = dma.hbm_to_vmem [thread:$0]  (!%p1328_p12), %s1366_s0, 64, %s291_s28, %s280_s3  }
  0x8d   : > { %p1541_p13 = scmp.ne.s32.totalorder %s1531_s7, 0 }
  0x8e   : > { %s1392_s14 = sand.u32 (!%p1541_p13), 1, %s1114_s22   ;;  %p1542_p8 = scmp.ne.s32.totalorder (!%p1541_p13), %s1529_s29, 0 }
  0x8f   : > { %299 = sbr.rel (%p1541_p13) target bundleno = 423 (0x1a7), region = 40  ;;  %s731_s2 = sshll.u32 (!%p1541_p13), %s1392_s14, 3 }
  0x90   : > { %s302_s17 = scalar_lea.sflag (!%p1541_p13), [#allocation3], %s1392_s14  ;;  %s1398_s20 = scalar_lea.vmem (!%p1541_p13), [#allocation2], %s731_s2 }
  0x96   : > { %1085 = dma.done.wait (%p1542_p8), %s302_s17, 128  }
  0x97   : > { %1087 = vsyncadd (%p1542_p8), %s302_s17, 4294967168  ;;  %s310_s0 = sand.u32 1, %s1209_s27   ;;  %s732_s3 = sshll.u32 %s1392_s14, 2 }
  0x98   : > { %s311_s7 = scalar_lea.sflag [#allocation6], %s310_s0  ;;  %s1408_s13 = scalar_lea.vmem [#allocation5], %s732_s3 }
  0x99   : > { %1089 = dma.done.wait (%p1542_p8), %s311_s7, 64  }
  0x9a   : > { %1091 = vsyncadd (%p1542_p8), %s311_s7, 4294967232  ;;  %p1543_p12 = scmp.eq.s32.totalorder %s1209_s27, 0 }
  0x9c   : > { %1093 = dma.done.wait (%p1543_p12), [#allocation6], 512   ;;  %p1544_p2 = pmov %p1543_p12 }
  0x9e   : > { %1095 = vsyncadd (%p1544_p2), [#allocation6], 4294966784  ;;  %p1545_p11 = pmov %p1544_p2 }
  0x9f   : > { %p1546_p0 = pmov %p1544_p2 }
  0xa0   : > { %1097 = dma.done.wait (%p1545_p11), [#allocation9], 512  }
  0xa1   : > { %1099 = vsyncadd (%p1546_p0), [#allocation9], 4294966784  ;;  %v1138_v0 = vmov 0.0|0.0   ;;  %vm1139_vm0 = vmmov 0   ;;  %v1140_v1 = vmov 0.0   ;;  %v362_v2 = vld [vmem:[#allocation7] sm:$0xff] }
  0xa2   : > { %778 = vmatprep.subr.bf16.mxu0 %v1138_v0  ;;  %784 = vmatprep.subr.bf16.mxu1 %v1138_v0  ;;  %v363_v3 = vld [vmem:[#allocation7 + $0x8] sm:$0xff]  ;;  %v454_v4 = vld [vmem:[#allocation8] sm:$0xff]  ;;  %v364_v7 = vld [vmem:[#allocation7 + $0x10] sm:$0xff]  ;;  %vm373_vm1 = vcmask 261120   ;;  %s743_s27 = sshll.u32 %s1122_s24, 6  ;;  %s360_s29 = scalar_lea.vmem [#allocation11], %s732_s3 }
  0xa3   : > { %764 = vmatprep.mubr.msk.f32.mxu0 %vm1139_vm0, %v1140_v1  ;;  %775 = vmatprep.mubr.msk.f32.mxu1 %vm1139_vm0, %v1140_v1  ;;  %v779_v5 = vpack.c.bf16 %v363_v3, %v362_v2  ;;  %v455_v6 = vld [vmem:[#allocation8 + $0x8] sm:$0xff]  ;;  %v365_v8 = vld [vmem:[#allocation7 + $0x18] sm:$0xff]  ;;  %v456_v10 = vld [vmem:[#allocation8 + $0x10] sm:$0xff]  ;;  %s566_s28 = sshll.u32 %s360_s29, 4  ;;  %s742_s19 = sshll.u32 %s1122_s24, 7  ;;  %vm531_vm2 = vcmask 519168   ;;  %s1438_s28 = int_to_ptr.vmem [resolvable:$true] %s566_s28 }
  0xa4   : > { %v785_v9 = vpack.c.bf16 %v455_v6, %v454_v4  ;;  %v457_v11 = vld [vmem:[#allocation8 + $0x18] sm:$0xff]  ;;  %v782_v12 = vpack.c.bf16 %v365_v8, %v364_v7  ;;  %v361_v14 = vld [vmem:[%s1398_s20] sm:$0xff]  ;;  %s353_s18 = scalar_lea.vmem [#allocation10], %s731_s2  ;;  %vm447_vm3 = vcmask 523264   ;;  %s1436_s17 = scalar_lea.hbm %s1520_s6, %s743_s27 }
  0xa5   : > { %780 = vmatpush3.bf16.msra.mxu0 %v779_v5  ;;  %v788_v13 = vpack.c.bf16 %v457_v11, %v456_v10  ;;  %v453_v15 = vld [vmem:[%s1408_s13] sm:$0xf]  ;;  %v737_v16 = vld [vmem:[%s1518_s4] ss:$0 sm:$0xff]  ;;  %s553_s9 = sshll.u32 %s353_s18, 4  ;;  %s1443_s20 = scalar_lea.hbm %s1519_s5, %s742_s19  ;;  %s1445_s9 = int_to_ptr.vmem [resolvable:$true] %s553_s9 }
  0xa6   : > { %786 = vmatpush3.bf16.msra.mxu1 %v785_v9  ;;  %781 = vmatprep.subr.bf16.mxu0 %v1138_v0  ;;  %s539_s0 = scalar_lea.sflag [#allocation12], %s1392_s14  ;;  %s1004_s3 = scalar_lea.vmem %s1438_s28, 64 }
  0xa7   : > { %787 = vmatprep.subr.bf16.mxu1 %v1138_v0  ;;  %p1005_p1 = scmp.ne.s32.totalorder %s1438_s28, %s1004_s3  ;;  %p1547_p6 = scmp.ne.s32.totalorder %s1537_s10, 0 }
  0xa8   : > { %s1141_s7 = smov [#allocation11]  }
  0xa9   : > { %783 = vmatpush3.bf16.msra.mxu0 %v782_v12  ;;  %p1006_p10 = pnand %p1005_p1, %p1547_p6  ;;  %s1008_s13 = sshll.u32 %s1141_s7, 4  ;;  %s1009_s13 = int_to_ptr.vmem [resolvable:$false] %s1008_s13 }
  0xaa   : > { %789 = vmatpush3.bf16.msra.mxu1 %v788_v13  ;;  %s1010_s27 = scalar_lea.vmem %s1009_s13, 128  ;;  %p1011_p4 = scmp.lt.s32.totalorder %s1438_s28, %s1009_s13 }
  0xab   : > { %p1007_p3 = pneg %p1006_p10  ;;  %p1012_p9 = scmp.lt.s32.totalorder %s1010_s27, %s1004_s3 }
  0xac   : > { %765 = vmatmul.mubr.msk.f32.vlgmr.msra.gmra.mrb[0].mxu0 %vm373_vm1, %v361_v14 }
  0xad   : > { %776 = vmatmul.mubr.msk.f32.vlgmr.msra.gmra.mrb[0].mxu1 %vm373_vm1, %v453_v15  ;;  %p1013_p5 = por %p1012_p9, %p1011_p4 }
  0xaf   : > { %p1014_p7 = pnand %p1013_p5, %p1007_p3 }
 0x17f   : > { %v443_v17 = vpop.f32.mrb[0].mxu0 }
 0x180   : > { %v444_v18 = vadd.f32 %v737_v16, %v443_v17  ;;  %v766_v19 = vpop.f32.mrb[1].mxu0  ;;  %v527_v20 = vpop.f32.mrb[0].mxu1 }
 0x181   : > { %532 = vst.msk [vmem:[%s360_s29] sm:$0xf] %vm531_vm2, %v527_v20  ;;  %v777_v21 = vpop.f32.mrb[1].mxu1 }
 0x182   : > { %448 = vst.msk [vmem:[%s353_s18] sm:$0xff] %vm447_vm3, %v444_v18 }
 0x183   : > { %1017 = shalt.err (!%p1014_p7)
}
 0x184   : > { %s1018_s29 = scalar_lea.hbm %s1436_s17, 64  ;;  %s1022_s19 = scalar_lea.hbm %s1520_s6, 128 }
 0x185   : > { %p1019_p13 = scmp.ne.s32.totalorder %s1436_s17, %s1018_s29  ;;  %p1023_p2 = scmp.lt.u32.totalorder %s1436_s17, %s1520_s6 }
 0x186   : > { %p1024_p11 = scmp.lt.u32.totalorder %s1022_s19, %s1018_s29  ;;  %p1026_p1 = scmp.lt.u32.totalorder %s1018_s29, %s1436_s17 }
 0x187   : > { %p1020_p8 = pnand %p1019_p13, %p1547_p6 }
 0x188   : > { %p1025_p0 = por %p1024_p11, %p1023_p2 }
 0x189   : > { %p1021_p12 = pneg %p1020_p8 }
 0x18a   : > { %p1027_p10 = por %p1026_p1, %p1025_p0 }
 0x18c   : > { %p1028_p3 = pnand %p1027_p10, %p1021_p12 }
 0x18e   : > { %1031 = shalt.err (!%p1028_p3)
}
 0x18f   : > { %803 = dma.vmem_to_hbm [thread:$0]  (%p1547_p6), %s1438_s28, 64, %s1436_s17, %s539_s0  }
 0x190   : > { %s534_s15 = scalar_lea.sflag [#allocation4], %s1392_s14  ;;  %s1032_s24 = scalar_lea.vmem %s1445_s9, 128 }
 0x191   : > { %p1033_p4 = scmp.ne.s32.totalorder %s1445_s9, %s1032_s24  ;;  %s1142_s2 = smov [#allocation10]  }
 0x192   : > { %s1036_s3 = sshll.u32 %s1142_s2, 4  ;;  %s1037_s3 = int_to_ptr.vmem [resolvable:$false] %s1036_s3 }
 0x193   : > { %p1034_p9 = pnand %p1033_p4, %p1547_p6  ;;  %s1038_s7 = scalar_lea.vmem %s1037_s3, 256 }
 0x194   : > { %p1039_p7 = scmp.lt.s32.totalorder %s1445_s9, %s1037_s3  ;;  %p1040_p13 = scmp.lt.s32.totalorder %s1038_s7, %s1032_s24 }
 0x195   : > { %p1035_p5 = pneg %p1034_p9 }
 0x196   : > { %p1041_p8 = por %p1040_p13, %p1039_p7 }
 0x198   : > { %p1042_p12 = pnand %p1041_p8, %p1035_p5 }
 0x19a   : > { %1045 = shalt.err (!%p1042_p12)
}
 0x19b   : > { %s1046_s14 = scalar_lea.hbm %s1443_s20, 128  ;;  %s1050_s0 = scalar_lea.hbm %s1519_s5, 256 }
 0x19c   : > { %p1047_p2 = scmp.ne.s32.totalorder %s1443_s20, %s1046_s14  ;;  %p1051_p1 = scmp.lt.u32.totalorder %s1443_s20, %s1519_s5 }
 0x19d   : > { %p1052_p10 = scmp.lt.u32.totalorder %s1050_s0, %s1046_s14  ;;  %p1054_p4 = scmp.lt.u32.totalorder %s1046_s14, %s1443_s20 }
 0x19e   : > { %p1048_p11 = pnand %p1047_p2, %p1547_p6 }
 0x19f   : > { %p1053_p3 = por %p1052_p10, %p1051_p1 }
 0x1a0   : > { %p1049_p0 = pneg %p1048_p11 }
 0x1a1   : > { %p1055_p9 = por %p1054_p4, %p1053_p3 }
 0x1a3   : > { %p1056_p5 = pnand %p1055_p9, %p1049_p0 }
 0x1a5   : > { %1059 = shalt.err (!%p1056_p5)
}
 0x1a6   : > { %802 = dma.vmem_to_hbm [thread:$0]  (%p1547_p6), %s1445_s9, 128, %s1443_s20, %s534_s15  }
 0x1a7 PF: > { %s578_s29 = sand.u32 1, %s1110_s21   ;;  %p1548_p7 = scmp.ne.s32.totalorder %s1530_s30, 0 }
 0x1a8   : > { %p1549_p13 = scmp.ge.s32.totalorder %s1130_s26, 2  ;;  %s579_s11 = scalar_lea.sflag [#allocation4], %s578_s29 }
 0x1aa   : > { %p821_p8 = pnand %p1549_p13, %p1548_p7 }
 0x1ac   : > { %1101 = dma.done.wait (!%p821_p8), %s579_s11, 128  }
 0x1ad   : > { %1103 = vsyncadd (!%p821_p8), %s579_s11, 4294967168  ;;  %s588_s16 = scalar_lea.sflag [#allocation12], %s578_s29 }
 0x1ae   : > { %1105 = dma.done.wait (!%p821_p8), %s588_s16, 64  }
 0x1af   : > { %1107 = vsyncadd (!%p821_p8), %s588_s16, 4294967232  ;;  %s30_s26 = sadd.s32 1, %s1130_s26   ;;  %s1550_s10 = sld [smem:[#allocation19_spill]] }
 0x1b0   : > { %p27_p12 = scmp.ge.s32.totalorder %s30_s26, 4   ;;  %s1551_s21 = smov %s1114_s22 }
 0x1b1   : > { %s1552_s22 = smov %s1118_s23  ;;  %s1553_s23 = smov %s1319_s8 }
 0x1b2   : > { %s1554_s24 = smov %s1126_s25  ;;  %29 = sbr.rel (!%p27_p12) target bundleno = 15 (0xf), region = 127 }
 0x1b5   : > { %s1555_s25 = smov %s1550_s10 }
 0x1b9   :  { %593 = vsyncpa [#allocation3], 1 }
 0x1ba   :  { %595 = vsyncpa [#allocation3 + $0x1], 1 }
 0x1bb   :  { %596 = vsyncpa [#allocation6], 1 }
 0x1bc   :  { %598 = vsyncpa [#allocation6 + $0x1], 1 }
 0x1bd   :  { %599 = vsyncpa [#allocation9], 1 }
 0x1be   :  { %600 = vsyncpa [#allocation4], 1 }
 0x1bf   :  { %602 = vsyncpa [#allocation4 + $0x1], 1 }
 0x1c0   :  { %603 = vsyncpa [#allocation12], 1 }
 0x1c1   :  { %605 = vsyncpa [#allocation12 + $0x1], 1 }

</bundles_post_ra>
